<compile_context>
chip_gen: v5e
topology: v5e:2x2
jax: 0.10.0
libtpu: 0.0.40
codegen_flags: <defaults>
</compile_context>

<pallas_src>
import math

import jax
import jax.numpy as jnp
from jax.experimental import pallas as pl
from jax.experimental.pallas import tpu as pltpu


def _outconv_kernel(x_ref, w_ref, b_ref, o_ref):
    # x_ref: (Bb, C_in, TL)   w_ref: (C_out, C_in)   b_ref: (C_out, 1)
    # o_ref: (Bb, C_out, TL)
    w = w_ref[...]
    b = b_ref[...].astype(jnp.float32)               # (C_out, 1), broadcasts over L
    # Static unroll over the (small) batch block: Bb clean 2-D MXU matmuls.
    for i in range(x_ref.shape[0]):
        y = jnp.dot(w, x_ref[i], preferred_element_type=jnp.float32)  # (C_out, TL)
        o_ref[i] = (y + b).astype(o_ref.dtype)


def _round_up(a, b):
    return ((a + b - 1) // b) * b


def _pick_l_tile(L, tl_target):
    """Lane-dense L tile (multiple of 128) minimizing zero-pad waste."""
    if L < 128:
        return L                        # full (small) dim; allowed by Mosaic.
    lp128 = _round_up(L, 128)
    if lp128 <= tl_target:
        return lp128                    # single L tile, no extra waste.
    best_tl, best_pad = 128, None
    tl = (tl_target // 128) * 128
    while tl >= 128:
        pad = _round_up(L, tl) - L
        if best_pad is None or pad < best_pad:
            best_tl, best_pad = tl, pad
        tl -= 128
    return best_tl


def _pick_batch_block(N, bb_target):
    """Batch block minimizing batch-pad waste (prefer larger blocks)."""
    best_bb, best_pad = 1, None
    for bb in range(min(bb_target, N), 0, -1):
        pad = _round_up(N, bb) - N
        if best_pad is None or pad < best_pad:
            best_bb, best_pad = bb, pad
        if pad == 0:
            break
    return best_bb


def outconv(x, weight, bias, *, tl_target=2048, bb_target=8,
            vmem_budget_bytes=12 * 1024 * 1024):
    """1x1 Conv1d.  x: (N, C_in, L); weight: (C_out, C_in) or (C_out, C_in, 1);
    bias: (C_out,)."""
    if weight.ndim == 3:                # accept the raw PyTorch Conv1d layout
        weight = weight[:, :, 0]
    N, C_in, L = x.shape
    C_out = weight.shape[0]
    assert weight.shape == (C_out, C_in) and bias.shape == (C_out,)
    itemsize = jnp.dtype(x.dtype).itemsize

    TL = _pick_l_tile(L, tl_target)
    Bb = _pick_batch_block(N, bb_target)

    # Keep the double-buffered working set comfortably inside scoped VMEM.
    def _working_set(bb, tl):
        io_blocks = 2 * itemsize * bb * tl * (C_in + C_out)   # x + out, 2x buffered
        resident = itemsize * C_out * (C_in + 1)              # weight + bias
        return io_blocks + resident

    while _working_set(Bb, TL) > vmem_budget_bytes and TL > 128:
        TL -= 128
    while _working_set(Bb, TL) > vmem_budget_bytes and Bb > 1:
        Bb -= 1

    # Pad to tile multiples (zero pad; padded rows/cols are sliced off).
    Lp = _round_up(L, TL)
    Np = _round_up(N, Bb)
    x_p = x
    if (Np, Lp) != (N, L):
        x_p = jnp.pad(x, ((0, Np - N), (0, 0), (0, Lp - L)))

    b2d = bias.reshape(C_out, 1)
    grid = (Np // Bb, Lp // TL)

    out = pl.pallas_call(
        _outconv_kernel,
        out_shape=jax.ShapeDtypeStruct((Np, C_out, Lp), x.dtype),
        grid_spec=pltpu.PrefetchScalarGridSpec(
            num_scalar_prefetch=0,
            grid=grid,
            in_specs=[
                pl.BlockSpec((Bb, C_in, TL), lambda nb, lb: (nb, 0, lb)),
                pl.BlockSpec((C_out, C_in), lambda nb, lb: (0, 0)),   # resident
                pl.BlockSpec((C_out, 1), lambda nb, lb: (0, 0)),      # resident
            ],
            out_specs=pl.BlockSpec((Bb, C_out, TL), lambda nb, lb: (nb, 0, lb)),
        ),
        compiler_params=pltpu.CompilerParams(
            dimension_semantics=("parallel", "parallel")),
    )(x_p, weight, b2d)

    if (Np, Lp) != (N, L):
        out = out[:N, :, :L]
    return out


def init_outconv_params(key, in_channels, out_channels):
    # Matches PyTorch Conv1d default init (uniform +/- 1/sqrt(fan_in)),
    # deterministic via PRNGKey.
    kw, kb = jax.random.split(key)
    bound = 1.0 / math.sqrt(in_channels)  # kernel_size = 1 -> fan_in = in_channels
    weight = jax.random.uniform(kw, (out_channels, in_channels),
                                minval=-bound, maxval=bound, dtype=jnp.float32)
    bias = jax.random.uniform(kb, (out_channels,),
                              minval=-bound, maxval=bound, dtype=jnp.float32)
    return weight, bias


def _reference(x, weight, bias):
    return jnp.einsum("oc,ncl->nol", weight, x) + bias[None, :, None]


if __name__ == "__main__":
    key = jax.random.PRNGKey(0)
    k_x1, k_x2, k_p = jax.random.split(key, 3)

    # Small shapes consistent with the module (N, C_in, L), C_out classes.
    N, C_in, C_out, L = 2, 4, 3, 16
    weight, bias = init_outconv_params(k_p, C_in, C_out)

    x_small = jax.random.normal(k_x1, (N, C_in, L), dtype=jnp.float32)
    out_small = jax.block_until_ready(outconv(x_small, weight, bias))
    assert out_small.shape == (N, C_out, L)
    assert jnp.allclose(out_small, _reference(x_small, weight, bias),
                        atol=1e-5, rtol=1e-5)

    # Second case exercising the L-tiled + batch-blocked + padded path
    # (L not a multiple of 128, N not a multiple of the default batch block).
    N2, L2 = 3, 640
    x_big = jax.random.normal(k_x2, (N2, C_in, L2), dtype=jnp.float32)
    out_big = jax.block_until_ready(outconv(x_big, weight, bias))
    assert out_big.shape == (N2, C_out, L2)
    assert jnp.allclose(out_big, _reference(x_big, weight, bias),
                        atol=1e-5, rtol=1e-5)

    print("KERNEL_OK")
</pallas_src>

<mosaic_0001>
module attributes {stable_mosaic.version = 11 : i64} {
  func.func @_outconv_kernel(%arg0: i32, %arg1: i32, %arg2: memref<2x4x16xf32, #tpu.memory_space<vmem>>, %arg3: memref<3x4xf32, #tpu.memory_space<vmem>>, %arg4: memref<3x1xf32, #tpu.memory_space<vmem>>, %arg5: memref<2x3x16xf32, #tpu.memory_space<vmem>>) attributes {dimension_semantics = [#tpu.dimension_semantics<parallel>, #tpu.dimension_semantics<parallel>], iteration_bounds = array<i64: 1, 1>, scalar_prefetch = 0 : i64, scratch_operands = 0 : i64, tpu.core_type = #tpu.core_type<tc>, window_params = [{transform_indices = @transform_0, window_bounds = array<i64: 2, 4, 16>}, {pipeline_mode = #tpu.pipeline_mode<synchronous>, transform_indices = @transform_1, window_bounds = array<i64: 3, 4>}, {pipeline_mode = #tpu.pipeline_mode<synchronous>, transform_indices = @transform_2, window_bounds = array<i64: 3, 1>}, {transform_indices = @transform_3, window_bounds = array<i64: 2, 3, 16>}]} {
    %c0 = arith.constant 0 : index
    %c0_0 = arith.constant 0 : index
    %0 = vector.load %arg3[%c0, %c0_0] : memref<3x4xf32, #tpu.memory_space<vmem>>, vector<3x4xf32>
    %c0_1 = arith.constant 0 : index
    %c0_2 = arith.constant 0 : index
    %1 = vector.load %arg4[%c0_1, %c0_2] : memref<3x1xf32, #tpu.memory_space<vmem>>, vector<3x1xf32>
    %c0_3 = arith.constant 0 : index
    %c0_4 = arith.constant 0 : index
    %c0_5 = arith.constant 0 : index
    %2 = vector.load %arg2[%c0_3, %c0_4, %c0_5] : memref<2x4x16xf32, #tpu.memory_space<vmem>>, vector<1x4x16xf32>
    %3 = vector.shape_cast %2 : vector<1x4x16xf32> to vector<4x16xf32>
    %cst = arith.constant dense<0.000000e+00> : vector<3x16xf32>
    %4 = tpu.matmul %0, %3, %cst {dimension_numbers = #tpu.dot_dimension_numbers<[1], [0], [0], [1], [0, 0, 1, 1], [], []>} : vector<3x4xf32>, vector<4x16xf32>, vector<3x16xf32> -> vector<3x16xf32>
    %5 = vector.broadcast %1 : vector<3x1xf32> to vector<3x16xf32>
    %6 = arith.addf %4, %5 : vector<3x16xf32>
    %c0_6 = arith.constant 0 : index
    %c0_7 = arith.constant 0 : index
    %c0_8 = arith.constant 0 : index
    %7 = vector.load %arg5[%c0_6, %c0_7, %c0_8] : memref<2x3x16xf32, #tpu.memory_space<vmem>>, vector<1x3x16xf32>
    %8 = vector.shape_cast %7 : vector<1x3x16xf32> to vector<3x16xf32>
    %9 = vector.shape_cast %6 : vector<3x16xf32> to vector<1x3x16xf32>
    tpu.vector_store %arg5[%c0_6, %c0_7, %c0_8], %9 {strides = array<i32>} : memref<2x3x16xf32, #tpu.memory_space<vmem>>, vector<1x3x16xf32>,
    %c1 = arith.constant 1 : index
    %c0_9 = arith.constant 0 : index
    %c0_10 = arith.constant 0 : index
    %10 = vector.load %arg2[%c1, %c0_9, %c0_10] : memref<2x4x16xf32, #tpu.memory_space<vmem>>, vector<1x4x16xf32>
    %11 = vector.shape_cast %10 : vector<1x4x16xf32> to vector<4x16xf32>
    %cst_11 = arith.constant dense<0.000000e+00> : vector<3x16xf32>
    %12 = tpu.matmul %0, %11, %cst_11 {dimension_numbers = #tpu.dot_dimension_numbers<[1], [0], [0], [1], [0, 0, 1, 1], [], []>} : vector<3x4xf32>, vector<4x16xf32>, vector<3x16xf32> -> vector<3x16xf32>
    %13 = vector.broadcast %1 : vector<3x1xf32> to vector<3x16xf32>
    %14 = arith.addf %12, %13 : vector<3x16xf32>
    %c1_12 = arith.constant 1 : index
    %c0_13 = arith.constant 0 : index
    %c0_14 = arith.constant 0 : index
    %15 = vector.load %arg5[%c1_12, %c0_13, %c0_14] : memref<2x3x16xf32, #tpu.memory_space<vmem>>, vector<1x3x16xf32>
    %16 = vector.shape_cast %15 : vector<1x3x16xf32> to vector<3x16xf32>
    %17 = vector.shape_cast %14 : vector<3x16xf32> to vector<1x3x16xf32>
    tpu.vector_store %arg5[%c1_12, %c0_13, %c0_14], %17 {strides = array<i32>} : memref<2x3x16xf32, #tpu.memory_space<vmem>>, vector<1x3x16xf32>,
    return
  }
  func.func @transform_0(%arg0: i32, %arg1: i32) -> (i32, i32, i32) {
    %c0_i32 = arith.constant 0 : i32
    %c0_i32_0 = arith.constant 0 : i32
    return %arg0, %c0_i32, %arg1 : i32, i32, i32
  }
  func.func @transform_1(%arg0: i32, %arg1: i32) -> (i32, i32) {
    %c0_i32 = arith.constant 0 : i32
    %c0_i32_0 = arith.constant 0 : i32
    %c0_i32_1 = arith.constant 0 : i32
    return %c0_i32, %c0_i32_0 : i32, i32
  }
  func.func @transform_2(%arg0: i32, %arg1: i32) -> (i32, i32) {
    %c0_i32 = arith.constant 0 : i32
    %c0_i32_0 = arith.constant 0 : i32
    %c0_i32_1 = arith.constant 0 : i32
    return %c0_i32, %c0_i32_0 : i32, i32
  }
  func.func @transform_3(%arg0: i32, %arg1: i32) -> (i32, i32, i32) {
    %c0_i32 = arith.constant 0 : i32
    %c0_i32_0 = arith.constant 0 : i32
    return %arg0, %c0_i32, %arg1 : i32, i32, i32
  }
}

</mosaic_0001>

<bundles_post_ra>
// kernel: tpu_custom_call.1
= control target key start
LH: loop header
LB: loop body
LE: loop exit
PB: predicated region body
PF: predicated region fallthrough
CT: control target
= control target key end

     0   :  { %8 = vsyncpa [#allocation3], 0  ;;  %s136_s15 = smov [#allocation2]   ;;  %s137_s17 = smov 64   ;;  %s175_s0 = inlined_call_operand.hbm [shape: f32[2,4,16], index: 0, kind: input, shape index: {}]   ;;  %s176_s1 = inlined_call_operand.vmem [shape: f32[3,4], index: 1, kind: input, shape index: {}]   ;;  %s177_s2 = inlined_call_operand.vmem [shape: f32[3,1], index: 2, kind: input, shape index: {}]   ;;  %s178_s3 = inlined_call_operand.vmem [shape: f32[2,3,16], index: 3, kind: output, shape index: {}]  }
   0x1   :  { %s13_s14 = sshll.u32 %s175_s0, 4  ;;  %s15_s16 = sshll.u32 %s136_s15, 4  ;;  %s14_s14 = int_to_ptr.hbm [resolvable:$true] %s13_s14  ;;  %s16_s16 = int_to_ptr.vmem [resolvable:$true] %s15_s16 }
   0x2   :  { %s138_s18 = smov 4  }
   0x3   :  { %21 = dma.hbm_to_vmem [thread:$0]  %s14_s14, 128, %s16_s16, [#allocation3], %s137_s17, %s137_s17, %s138_s18  }
   0x4   :  { %134 = dma.done.wait [#allocation3], 128  }
   0x5   :  { %135 = vsyncadd [#allocation3], 4294967168  ;;  %v139_v0 = vmov 0   ;;  %vm42_vm0 = vcmask 1043456   ;;  %vm38_vm1 = vcmask 31744   ;;  %vm66_vm2 = vcmask 124928  }
   0x6   :  { %109 = vset.pattern.permute.xlu0 %v139_v0  ;;  %v32_v1 = vld [vmem:[#allocation2] sm:$0xf]  ;;  %v69_v2 = vld [vmem:[#allocation2 + $0x4] sm:$0xf] }
   0x7   :  { %v30_v3 = vld [vmem:[%s176_s1] sm:$0x7]  ;;  %100 = vmatpush.msk.msra.mxu0 %vm42_vm0, %v32_v1  ;;  %102 = vmatpush.msk.msra.mxu1 %vm42_vm0, %v69_v2 }
   0x8   :  { %v31_v4 = vld [vmem:[%s177_s2] sm:$0x7]  ;;  %101 = vmatmul.msk.f32.vlgmr.msra.gmra.mxu0 %vm38_vm1, %v30_v3  ;;  %103 = vmatmul.msk.f32.vlgmr.msra.gmra.mxu1 %vm38_vm1, %v30_v3 }
   0x9   :  { %35 = vperm.xlu0 %109, %v31_v4  }
  0x7b   :  { %v36_v5 = vpop.permute.xlu0 %35 }
  0x85   :  { %v63_v6 = vpop.f32.mrf.mxu0  ;;  %v90_v7 = vpop.f32.mrf.mxu1 }
  0x86   :  { %v64_v8 = vadd.f32 %v63_v6, %v36_v5  ;;  %v91_v9 = vadd.f32 %v90_v7, %v36_v5 }
  0x88   :  { %67 = vst.msk [vmem:[%s178_s3] sm:$0x7] %vm66_vm2, %v64_v8 }
  0x89   :  { %104 = vst.msk [vmem:[%s178_s3 + $0x4] sm:$0x7] %vm66_vm2, %v91_v9 }
  0x8a   :  { %99 = vsyncpa [#allocation3], 1 }

</bundles_post_ra>
